<compile_context>
chip_gen: v7x
topology: tpu7x:2x2x1
jax: 0.10.0
libtpu: 0.0.40
codegen_flags: <defaults>
</compile_context>

<pallas_src>
import jax
import jax.numpy as jnp
from jax.experimental import pallas as pl
from jax.experimental.pallas import tpu as pltpu

_SQRT_HALF = 0.7071067811865476
_HEADROOM = 6 << 20  # compiler-internal scratch, semaphores, misc


def _round_up(a, b):
    return (a + b - 1) // b * b


def _exact_gelu(g):
    # torch.nn.functional.gelu default (erf form) -- matches diffusers GEGLU.
    return 0.5 * g * (1.0 + jax.lax.erf(g * _SQRT_HALF))


# ---------------------------------------------------------------------------
# Kernels
# ---------------------------------------------------------------------------

def _ffn_geglu_resident_kernel(x_ref, wh_ref, wg_ref, bh_ref, bg_ref,
                               w2_ref, b2_ref, o_ref):
    """Weights fully VMEM-resident; grid = (M tiles,)."""
    x = x_ref[...]
    h = jnp.dot(x, wh_ref[...], preferred_element_type=jnp.float32) + bh_ref[...]
    g = jnp.dot(x, wg_ref[...], preferred_element_type=jnp.float32) + bg_ref[...]
    gated = h * _exact_gelu(g)
    o_ref[...] = (jnp.dot(gated.astype(w2_ref.dtype), w2_ref[...],
                          preferred_element_type=jnp.float32)
                  + b2_ref[...]).astype(o_ref.dtype)


def _ffn_geglu_tiled_kernel(x_ref, wh_ref, wg_ref, bh_ref, bg_ref,
                            w2_ref, b2_ref, o_ref, acc_ref):
    """Inner dim tiled as a trailing reduction axis; grid = (M tiles, inner tiles)."""
    j = pl.program_id(1)
    x = x_ref[...]
    h = jnp.dot(x, wh_ref[...], preferred_element_type=jnp.float32) + bh_ref[...]
    g = jnp.dot(x, wg_ref[...], preferred_element_type=jnp.float32) + bg_ref[...]
    gated = h * _exact_gelu(g)
    partial = jnp.dot(gated.astype(w2_ref.dtype), w2_ref[...],
                      preferred_element_type=jnp.float32)

    @pl.when(j == 0)
    def _():
        acc_ref[...] = partial          # no zero-init store + reload on step 0

    @pl.when(j > 0)
    def _():
        acc_ref[...] += partial

    @pl.when(j == pl.num_programs(1) - 1)
    def _():
        o_ref[...] = (acc_ref[...] + b2_ref[...]).astype(o_ref.dtype)


# ---------------------------------------------------------------------------
# Wrapper: hardware probing, tile sizing, padding, pallas_call
# ---------------------------------------------------------------------------

def _vmem_capacity_bytes():
    try:
        cap = getattr(pltpu.get_tpu_info(), "vmem_capacity_bytes", None)
        if cap:
            return int(cap)
    except Exception:
        pass
    try:
        if "v7" in jax.devices()[0].device_kind.lower():
            return 64 << 20
    except Exception:
        pass
    return 128 << 20


def _hw_params():
    cap = _vmem_capacity_bytes()
    if cap <= (64 << 20):
        # v7x: 64 MiB physical per TensorCore -- leave headroom for the compiler.
        return {"vmem_budget": 48 << 20, "default_tile_m": 512}
    # v5e / v6e: 128 MiB VMEM.
    return {"vmem_budget": 96 << 20, "default_tile_m": 1024}


def _pick_tile_inner(inner_p, cap):
    """Largest 128-multiple <= cap that divides inner_p (inner_p is a 128-multiple)."""
    cap = max(128, (min(cap, inner_p) // 128) * 128)
    for t in range(cap, 127, -128):
        if inner_p % t == 0:
            return t
    return 128


def feedforward_geglu(x, w1, b1, w2, b2, *, tile_m=None, tile_inner=None):
    """GEGLU feed-forward: out = (h * gelu(gate)) @ w2 + b2, [h|gate] = x @ w1 + b1.

    x:  (B, S, dim)
    w1: (dim, 2*inner)   b1: (2*inner,)    -- GEGLU.proj, pre-transposed for x @ W
    w2: (inner, dim_out) b2: (dim_out,)    -- down projection
    """
    B, S, dim = x.shape
    inner = w1.shape[1] // 2
    dim_out = w2.shape[1]
    M = B * S

    hw = _hw_params()
    vmem_budget = hw["vmem_budget"]

    xb = jnp.dtype(x.dtype).itemsize
    wb = jnp.dtype(w1.dtype).itemsize
    sublane = 8 if xb >= 4 else 16

    # ---- split GEGLU projection into hidden / gate halves (wrapper side) ----
    w_h, w_g = w1[:, :inner], w1[:, inner:]
    b_h, b_g = b1[:inner], b1[inner:]

    # ---- lane-align every matmul dimension (zero padding is exact) ----------
    dim_p = _round_up(dim, 128)
    inner_p = _round_up(inner, 128)
    dout_p = _round_up(dim_out, 128)

    # ---- M tiling: big + MXU-aligned, but >= 2 tiles for v7x megacore -------
    m_align = 256 if M >= 2 * 256 else sublane
    if tile_m is None:
        tile_m = hw["default_tile_m"]
    tile_m = min(tile_m, _round_up(pl.cdiv(M, 2), m_align))
    tile_m = max(m_align, _round_up(tile_m, m_align))

    # ---- VMEM footprint models (double-buffered I/O + f32 GELU temporaries) -
    def resident_bytes(tm):
        weights = 2 * (2 * dim_p * inner_p + inner_p * dout_p
                       + 2 * inner_p + dout_p) * wb          # 2 pipeline buffers
        io = 2 * tm * dim_p * xb + 2 * tm * dout_p * xb
        temps = 4 * tm * inner_p * 4 + tm * dout_p * 4       # h, g, gated, erf, out
        return weights + io + temps + _HEADROOM

    def tiled_bytes(tm, ti):
        weights = 2 * (2 * dim_p * ti + ti * dout_p + 2 * ti + dout_p) * wb
        io = 2 * tm * dim_p * xb + 2 * tm * dout_p * xb
        temps = 4 * tm * ti * 4 + 2 * tm * dout_p * 4        # + partial + f32 acc
        return weights + io + temps + _HEADROOM

    def shrink_tile_m(tm, fits):
        while tm > m_align and not fits(tm):
            tm = max(m_align, _round_up(tm // 2, m_align))
        return tm

    # ---- path selection ------------------------------------------------------
    tm_res = shrink_tile_m(tile_m, lambda t: resident_bytes(t) <= vmem_budget)
    use_resident = (resident_bytes(tm_res) <= vmem_budget
                    and tm_res >= min(tile_m, 256))

    if use_resident:
        tile_m = tm_res
        ti = inner_p                      # single inner block (whole padded inner)
    else:
        max_ti = tile_inner if tile_inner is not None else 512
        ti = _pick_tile_inner(inner_p, max_ti)
        tile_m = shrink_tile_m(tile_m, lambda t: tiled_bytes(t, ti) <= vmem_budget)
        while ti > 128 and tiled_bytes(tile_m, ti) > vmem_budget:
            ti = _pick_tile_inner(inner_p, ti - 128)

    m_pad = _round_up(M, tile_m)

    # ---- padding (zero rows / cols are exact no-ops) -------------------------
    x2 = x.reshape(M, dim)
    if (m_pad, dim_p) != (M, dim):
        x2 = jnp.pad(x2, ((0, m_pad - M), (0, dim_p - dim)))
    if (dim_p, inner_p) != (dim, inner):
        w_h = jnp.pad(w_h, ((0, dim_p - dim), (0, inner_p - inner)))
        w_g = jnp.pad(w_g, ((0, dim_p - dim), (0, inner_p - inner)))
    if inner_p != inner:
        b_h = jnp.pad(b_h, ((0, inner_p - inner),))
        b_g = jnp.pad(b_g, ((0, inner_p - inner),))
    if (inner_p, dout_p) != (inner, dim_out):
        w2 = jnp.pad(w2, ((0, inner_p - inner), (0, dout_p - dim_out)))
    if dout_p != dim_out:
        b2 = jnp.pad(b2, ((0, dout_p - dim_out),))
    b_h2 = b_h.reshape(1, inner_p)
    b_g2 = b_g.reshape(1, inner_p)
    b2_2 = b2.reshape(1, dout_p)

    # ---- grid / specs --------------------------------------------------------
    if use_resident:
        grid = (m_pad // tile_m,)
        in_specs = [
            pl.BlockSpec((tile_m, dim_p), lambda i: (i, 0)),        # x
            pl.BlockSpec((dim_p, inner_p), lambda i: (0, 0)),       # w_h (resident)
            pl.BlockSpec((dim_p, inner_p), lambda i: (0, 0)),       # w_gate (resident)
            pl.BlockSpec((1, inner_p), lambda i: (0, 0)),           # b_h
            pl.BlockSpec((1, inner_p), lambda i: (0, 0)),           # b_gate
            pl.BlockSpec((inner_p, dout_p), lambda i: (0, 0)),      # w2 (resident)
            pl.BlockSpec((1, dout_p), lambda i: (0, 0)),            # b2
        ]
        out_specs = pl.BlockSpec((tile_m, dout_p), lambda i: (i, 0))
        scratch = []
        kernel = _ffn_geglu_resident_kernel
        dims = ("parallel",)
    else:
        grid = (m_pad // tile_m, inner_p // ti)
        in_specs = [
            pl.BlockSpec((tile_m, dim_p), lambda i, j: (i, 0)),     # x (resident over j)
            pl.BlockSpec((dim_p, ti), lambda i, j: (0, j)),         # w_h
            pl.BlockSpec((dim_p, ti), lambda i, j: (0, j)),         # w_gate
            pl.BlockSpec((1, ti), lambda i, j: (0, j)),             # b_h
            pl.BlockSpec((1, ti), lambda i, j: (0, j)),             # b_gate
            pl.BlockSpec((ti, dout_p), lambda i, j: (j, 0)),        # w2
            pl.BlockSpec((1, dout_p), lambda i, j: (0, 0)),         # b2
        ]
        out_specs = pl.BlockSpec((tile_m, dout_p), lambda i, j: (i, 0))
        scratch = [pltpu.VMEM((tile_m, dout_p), jnp.float32)]
        kernel = _ffn_geglu_tiled_kernel
        dims = ("parallel", "arbitrary")

    out = pl.pallas_call(
        kernel,
        out_shape=jax.ShapeDtypeStruct((m_pad, dout_p), x.dtype),
        grid_spec=pltpu.PrefetchScalarGridSpec(
            num_scalar_prefetch=0,
            grid=grid,
            in_specs=in_specs,
            out_specs=out_specs,
            scratch_shapes=scratch,
        ),
        compiler_params=pltpu.CompilerParams(
            dimension_semantics=dims,
            vmem_limit_bytes=vmem_budget,
        ),
    )(x2, w_h, w_g, b_h2, b_g2, w2, b2_2)

    return out[:M, :dim_out].reshape(B, S, dim_out)


# ---------------------------------------------------------------------------
# Reference + demo
# ---------------------------------------------------------------------------

def _reference(x, w1, b1, w2, b2):
    proj = jnp.einsum("bsd,dh->bsh", x, w1) + b1
    inner = proj.shape[-1] // 2
    h, g = proj[..., :inner], proj[..., inner:]
    y = h * jax.nn.gelu(g, approximate=False)
    return jnp.einsum("bsh,ho->bso", y, w2) + b2


if __name__ == "__main__":
    # Module config: dim=32, mult=4 -> inner_dim=128, dim_out=dim=32, geglu.
    B, S, dim = 2, 8, 32
    mult = 4
    inner_dim = dim * mult          # 128
    dim_out = dim                   # 32

    key = jax.random.PRNGKey(0)
    kx, kw1, kb1, kw2, kb2 = jax.random.split(key, 5)

    x = jax.random.normal(kx, (B, S, dim), dtype=jnp.float32)
    # GEGLU.proj: Linear(dim, inner_dim * 2); stored pre-transposed for x @ W.
    w1 = jax.random.normal(kw1, (dim, inner_dim * 2), dtype=jnp.float32) * 0.05
    b1 = jax.random.normal(kb1, (inner_dim * 2,), dtype=jnp.float32) * 0.05
    # net[2]: Linear(inner_dim, dim_out)
    w2 = jax.random.normal(kw2, (inner_dim, dim_out), dtype=jnp.float32) * 0.05
    b2 = jax.random.normal(kb2, (dim_out,), dtype=jnp.float32) * 0.05

    out = feedforward_geglu(x, w1, b1, w2, b2)
    out = jax.block_until_ready(out)

    ref = _reference(x, w1, b1, w2, b2)
    assert out.shape == (B, S, dim_out)
    assert jnp.allclose(out, ref, atol=1e-5, rtol=1e-5), "mismatch vs reference"

    print("KERNEL_OK")
</pallas_src>

<mosaic_0001>
module attributes {stable_mosaic.version = 11 : i64} {
  func.func @_ffn_geglu_resident_kernel(%arg0: i32, %arg1: memref<8x128xf32, #tpu.memory_space<vmem>>, %arg2: memref<128x128xf32, #tpu.memory_space<vmem>>, %arg3: memref<128x128xf32, #tpu.memory_space<vmem>>, %arg4: memref<1x128xf32, #tpu.memory_space<vmem>>, %arg5: memref<1x128xf32, #tpu.memory_space<vmem>>, %arg6: memref<128x128xf32, #tpu.memory_space<vmem>>, %arg7: memref<1x128xf32, #tpu.memory_space<vmem>>, %arg8: memref<8x128xf32, #tpu.memory_space<vmem>>) attributes {dimension_semantics = [#tpu.dimension_semantics<parallel>], iteration_bounds = array<i64: 2>, scalar_prefetch = 0 : i64, scratch_operands = 0 : i64, tpu.core_type = #tpu.core_type<tc>, window_params = [{transform_indices = @transform_0, window_bounds = array<i64: 8, 128>}, {pipeline_mode = #tpu.pipeline_mode<synchronous>, transform_indices = @transform_1, window_bounds = array<i64: 128, 128>}, {pipeline_mode = #tpu.pipeline_mode<synchronous>, transform_indices = @transform_2, window_bounds = array<i64: 128, 128>}, {pipeline_mode = #tpu.pipeline_mode<synchronous>, transform_indices = @transform_3, window_bounds = array<i64: 1, 128>}, {pipeline_mode = #tpu.pipeline_mode<synchronous>, transform_indices = @transform_4, window_bounds = array<i64: 1, 128>}, {pipeline_mode = #tpu.pipeline_mode<synchronous>, transform_indices = @transform_5, window_bounds = array<i64: 128, 128>}, {pipeline_mode = #tpu.pipeline_mode<synchronous>, transform_indices = @transform_6, window_bounds = array<i64: 1, 128>}, {transform_indices = @transform_7, window_bounds = array<i64: 8, 128>}]} {
    %c0 = arith.constant 0 : index
    %c0_0 = arith.constant 0 : index
    %0 = vector.load %arg1[%c0, %c0_0] : memref<8x128xf32, #tpu.memory_space<vmem>>, vector<8x128xf32>
    %c0_1 = arith.constant 0 : index
    %c0_2 = arith.constant 0 : index
    %1 = vector.load %arg2[%c0_1, %c0_2] : memref<128x128xf32, #tpu.memory_space<vmem>>, vector<128x128xf32>
    %cst = arith.constant dense<0.000000e+00> : vector<8x128xf32>
    %2 = tpu.matmul %0, %1, %cst {dimension_numbers = #tpu.dot_dimension_numbers<[1], [0], [0], [1], [0, 0, 1, 1], [], []>} : vector<8x128xf32>, vector<128x128xf32>, vector<8x128xf32> -> vector<8x128xf32>
    %c0_3 = arith.constant 0 : index
    %c0_4 = arith.constant 0 : index
    %3 = vector.load %arg4[%c0_3, %c0_4] : memref<1x128xf32, #tpu.memory_space<vmem>>, vector<1x128xf32>
    %4 = vector.broadcast %3 : vector<1x128xf32> to vector<8x128xf32>
    %5 = arith.addf %2, %4 : vector<8x128xf32>
    %c0_5 = arith.constant 0 : index
    %c0_6 = arith.constant 0 : index
    %6 = vector.load %arg3[%c0_5, %c0_6] : memref<128x128xf32, #tpu.memory_space<vmem>>, vector<128x128xf32>
    %cst_7 = arith.constant dense<0.000000e+00> : vector<8x128xf32>
    %7 = tpu.matmul %0, %6, %cst_7 {dimension_numbers = #tpu.dot_dimension_numbers<[1], [0], [0], [1], [0, 0, 1, 1], [], []>} : vector<8x128xf32>, vector<128x128xf32>, vector<8x128xf32> -> vector<8x128xf32>
    %c0_8 = arith.constant 0 : index
    %c0_9 = arith.constant 0 : index
    %8 = vector.load %arg5[%c0_8, %c0_9] : memref<1x128xf32, #tpu.memory_space<vmem>>, vector<1x128xf32>
    %9 = vector.broadcast %8 : vector<1x128xf32> to vector<8x128xf32>
    %10 = arith.addf %7, %9 : vector<8x128xf32>
    %cst_10 = arith.constant 5.000000e-01 : f32
    %11 = vector.broadcast %cst_10 : f32 to vector<8x128xf32>
    %12 = arith.mulf %11, %10 : vector<8x128xf32>
    %cst_11 = arith.constant 0.707106769 : f32
    %13 = vector.broadcast %cst_11 : f32 to vector<8x128xf32>
    %14 = arith.mulf %10, %13 : vector<8x128xf32>
    %15 = math.erf %14 : vector<8x128xf32>
    %cst_12 = arith.constant 1.000000e+00 : f32
    %16 = vector.broadcast %cst_12 : f32 to vector<8x128xf32>
    %17 = arith.addf %16, %15 : vector<8x128xf32>
    %18 = arith.mulf %12, %17 : vector<8x128xf32>
    %19 = arith.mulf %5, %18 : vector<8x128xf32>
    %c0_13 = arith.constant 0 : index
    %c0_14 = arith.constant 0 : index
    %20 = vector.load %arg6[%c0_13, %c0_14] : memref<128x128xf32, #tpu.memory_space<vmem>>, vector<128x128xf32>
    %cst_15 = arith.constant dense<0.000000e+00> : vector<8x128xf32>
    %21 = tpu.matmul %19, %20, %cst_15 {dimension_numbers = #tpu.dot_dimension_numbers<[1], [0], [0], [1], [0, 0, 1, 1], [], []>} : vector<8x128xf32>, vector<128x128xf32>, vector<8x128xf32> -> vector<8x128xf32>
    %c0_16 = arith.constant 0 : index
    %c0_17 = arith.constant 0 : index
    %22 = vector.load %arg7[%c0_16, %c0_17] : memref<1x128xf32, #tpu.memory_space<vmem>>, vector<1x128xf32>
    %23 = vector.broadcast %22 : vector<1x128xf32> to vector<8x128xf32>
    %24 = arith.addf %21, %23 : vector<8x128xf32>
    %c0_18 = arith.constant 0 : index
    %c0_19 = arith.constant 0 : index
    %25 = vector.load %arg8[%c0_18, %c0_19] : memref<8x128xf32, #tpu.memory_space<vmem>>, vector<8x128xf32>
    tpu.vector_store %arg8[%c0_18, %c0_19], %24 {strides = array<i32>} : memref<8x128xf32, #tpu.memory_space<vmem>>, vector<8x128xf32>,
    return
  }
  func.func @transform_0(%arg0: i32) -> (i32, i32) {
    %c0_i32 = arith.constant 0 : i32
    %c0_i32_0 = arith.constant 0 : i32
    return %arg0, %c0_i32 : i32, i32
  }
  func.func @transform_1(%arg0: i32) -> (i32, i32) {
    %c0_i32 = arith.constant 0 : i32
    %c0_i32_0 = arith.constant 0 : i32
    %c0_i32_1 = arith.constant 0 : i32
    return %c0_i32, %c0_i32_0 : i32, i32
  }
  func.func @transform_2(%arg0: i32) -> (i32, i32) {
    %c0_i32 = arith.constant 0 : i32
    %c0_i32_0 = arith.constant 0 : i32
    %c0_i32_1 = arith.constant 0 : i32
    return %c0_i32, %c0_i32_0 : i32, i32
  }
  func.func @transform_3(%arg0: i32) -> (i32, i32) {
    %c0_i32 = arith.constant 0 : i32
    %c0_i32_0 = arith.constant 0 : i32
    %c0_i32_1 = arith.constant 0 : i32
    return %c0_i32, %c0_i32_0 : i32, i32
  }
  func.func @transform_4(%arg0: i32) -> (i32, i32) {
    %c0_i32 = arith.constant 0 : i32
    %c0_i32_0 = arith.constant 0 : i32
    %c0_i32_1 = arith.constant 0 : i32
    return %c0_i32, %c0_i32_0 : i32, i32
  }
  func.func @transform_5(%arg0: i32) -> (i32, i32) {
    %c0_i32 = arith.constant 0 : i32
    %c0_i32_0 = arith.constant 0 : i32
    %c0_i32_1 = arith.constant 0 : i32
    return %c0_i32, %c0_i32_0 : i32, i32
  }
  func.func @transform_6(%arg0: i32) -> (i32, i32) {
    %c0_i32 = arith.constant 0 : i32
    %c0_i32_0 = arith.constant 0 : i32
    %c0_i32_1 = arith.constant 0 : i32
    return %c0_i32, %c0_i32_0 : i32, i32
  }
  func.func @transform_7(%arg0: i32) -> (i32, i32) {
    %c0_i32 = arith.constant 0 : i32
    %c0_i32_0 = arith.constant 0 : i32
    return %arg0, %c0_i32 : i32, i32
  }
}

</mosaic_0001>

<bundles_post_ra>
// kernel: tpu_custom_call.1
= control target key start
LH: loop header
LB: loop body
LE: loop exit
PB: predicated region body
PF: predicated region fallthrough
CT: control target
= control target key end

     0   :  { %12 = vsyncpa [#allocation3], 0  ;;  %s1870_s0 = inlined_call_operand.hbm [shape: f32[16,128], index: 0, kind: input, shape index: {}]   ;;  %s1871_s1 = inlined_call_operand.hbm [shape: f32[128,128], index: 1, kind: input, shape index: {}]   ;;  %s1872_s2 = inlined_call_operand.hbm [shape: f32[128,128], index: 2, kind: input, shape index: {}]   ;;  %s1873_s3 = inlined_call_operand.hbm [shape: f32[1,128], index: 3, kind: input, shape index: {}]   ;;  %s1874_s4 = inlined_call_operand.hbm [shape: f32[1,128], index: 4, kind: input, shape index: {}]   ;;  %s1875_s5 = inlined_call_operand.hbm [shape: f32[128,128], index: 5, kind: input, shape index: {}]   ;;  %s1876_s6 = inlined_call_operand.hbm [shape: f32[1,128], index: 6, kind: input, shape index: {}]   ;;  %s1877_s7 = inlined_call_operand.hbm [shape: f32[16,128], index: 7, kind: output, shape index: {}]  }
   0x1   :  { %14 = vsyncpa [#allocation3 + $0x1], 0 }
   0x2   :  { %15 = vsyncpa [#allocation6], 0 }
   0x3   :  { %16 = vsyncpa [#allocation9], 0 }
   0x4   :  { %17 = vsyncpa [#allocation12], 0 }
   0x5   :  { %18 = vsyncpa [#allocation4], 0 }
   0x6   :  { %20 = vsyncpa [#allocation4 + $0x1], 0  ;;  %s1503_s24 = smov 0   ;;  %s1505_s25 = smov 0  }
   0x7   :  { %s1507_s26 = smov 0   ;;  %s1509_s27 = smov 0  }
   0x8 LB: > { %s1450_s28 = smov [#allocation5]   ;;  %s1524_s30 = sadd.s32 4294967295, %s1448_s27   ;;  %s1448_s27 = sphi %s1509_s27, %s1903_s27   ;;  %s1444_s26 = sphi %s1507_s26, %s1902_s26   ;;  %s1440_s25 = sphi %s1505_s25, %s1901_s25   ;;  %s1436_s24 = sphi %s1503_s24, %s1900_s24  }
   0x9   : > { %s221_s29 = sshll.u32 %s1450_s28, 4  ;;  %p804_p0 = scmp.ge.s32.totalorder %s1448_s27, 1  ;;  %s1529_s29 = int_to_ptr.vmem [resolvable:$true] %s221_s29 }
   0xa   : > { %p1878_p1 = scmp.eq.s32.totalorder %s1524_s30, 0  ;;  %p209_p2 = scmp.lt.s32.totalorder %s1448_s27, 3 }
   0xb   : > { %s1451_s9 = smov [#allocation8]   ;;  %s1452_s12 = smov [#allocation11]  }
   0xc   : > { %p1531_p3 = pnand %p804_p0, %p209_p2  ;;  %s248_s10 = sshll.u32 %s1451_s9, 4  ;;  %s1544_s10 = int_to_ptr.vmem [resolvable:$true] %s248_s10 }
   0xd   : > { %s269_s13 = sshll.u32 %s1452_s12, 4  ;;  %s1172_s16 = scalar_lea.hbm %s1871_s1, 2048  ;;  %s1546_s13 = int_to_ptr.vmem [resolvable:$true] %s269_s13 }
   0xe   : > { %s1881_s8 = scalar_select %p1531_p3, 1, 0 }
   0xf   : > { %p1086_p5 = pneg %p1531_p3  ;;  %p1173_p7 = scmp.ne.s32.totalorder %s1871_s1, %s1172_s16 }
  0x10   : > { %p1179_p11 = scmp.lt.u32.totalorder %s1172_s16, %s1871_s1 }
  0x11   : > { %p1540_p6 = pnand %p1086_p5, %p1878_p1 }
  0x13   : > { %p1556_p8 = pneg %p1540_p6 }
  0x15   : > { %p1175_p9 = pnand %p1556_p8, %p1173_p7 }
  0x17   : > { %p1176_p10 = pneg %p1175_p9 }
  0x19   : > { %p1181_p12 = pnand %p1179_p11, %p1176_p10 }
  0x1b   : > { %1184 = shalt.err (!%p1181_p12)
}
  0x1c   : > { %s1185_s22 = scalar_lea.vmem %s1529_s29, 2048  ;;  %p1193_p5 = scmp.lt.s32.totalorder %s1529_s29, %s1529_s29 }
  0x1d   : > { %p1186_p13 = scmp.ne.s32.totalorder %s1529_s29, %s1185_s22  ;;  %p1194_p4 = scmp.lt.s32.totalorder %s1185_s22, %s1185_s22 }
  0x1f   : > { %p1188_p0 = pnand %p1186_p13, %p1556_p8  ;;  %p1195_p7 = por %p1194_p4, %p1193_p5 }
  0x21   : > { %p1189_p2 = pneg %p1188_p0 }
  0x23   : > { %p1196_p9 = pnand %p1195_p7, %p1189_p2 }
  0x25   : > { %1199 = shalt.err (!%p1196_p9)
}
  0x26   : > { %s1453_s23 = smov 128   ;;  %s1454_s28 = smov 8  }
  0x27   : > { %1089 = dma.hbm_to_vmem [thread:$0]  (!%p1540_p6), %s1871_s1, 2048, %s1529_s29, [#allocation6], %s1453_s23, %s1453_s23, %s1454_s28  }
  0x28   : > { %s1200_s16 = scalar_lea.hbm %s1873_s3, 16 }
  0x29   : > { %p1201_p4 = scmp.ne.s32.totalorder %s1873_s3, %s1200_s16  ;;  %p1207_p12 = scmp.lt.u32.totalorder %s1200_s16, %s1873_s3 }
  0x2b   : > { %p1203_p10 = pnand %p1201_p4, %p1556_p8 }
  0x2d   : > { %p1204_p11 = pneg %p1203_p10 }
  0x2f   : > { %p1209_p13 = pnand %p1207_p12, %p1204_p11 }
  0x31   : > { %1212 = shalt.err (!%p1209_p13)
}
  0x32   : > { %s1213_s29 = scalar_lea.vmem %s1544_s10, 16  ;;  %s1220_s22 = scalar_lea.vmem %s1544_s10, 32 }
  0x33   : > { %p1214_p0 = scmp.ne.s32.totalorder %s1544_s10, %s1213_s29  ;;  %p1221_p7 = scmp.lt.s32.totalorder %s1544_s10, %s1544_s10 }
  0x34   : > { %p1222_p9 = scmp.lt.s32.totalorder %s1220_s22, %s1213_s29 }
  0x35   : > { %p1216_p2 = pnand %p1214_p0, %p1556_p8 }
  0x36   : > { %p1223_p4 = por %p1222_p9, %p1221_p7 }
  0x37   : > { %p1217_p5 = pneg %p1216_p2 }
  0x39   : > { %p1224_p10 = pnand %p1223_p4, %p1217_p5 }
  0x3b   : > { %1227 = shalt.err (!%p1224_p10)
}
  0x3c   : > { %1095 = dma.hbm_to_vmem [thread:$0]  (!%p1540_p6), %s1873_s3, 16, %s1544_s10, [#allocation9]  }
  0x3d   : > { %s1228_s16 = scalar_lea.hbm %s1875_s5, 2048 }
  0x3e   : > { %p1229_p11 = scmp.ne.s32.totalorder %s1875_s5, %s1228_s16  ;;  %p1235_p0 = scmp.lt.u32.totalorder %s1228_s16, %s1875_s5 }
  0x40   : > { %p1231_p12 = pnand %p1229_p11, %p1556_p8 }
  0x42   : > { %p1232_p13 = pneg %p1231_p12 }
  0x44   : > { %p1237_p2 = pnand %p1235_p0, %p1232_p13 }
  0x46   : > { %1240 = shalt.err (!%p1237_p2)
}
  0x47   : > { %s1241_s10 = scalar_lea.vmem %s1546_s13, 2048  ;;  %p1249_p4 = scmp.lt.s32.totalorder %s1546_s13, %s1546_s13 }
  0x48   : > { %p1242_p5 = scmp.ne.s32.totalorder %s1546_s13, %s1241_s10  ;;  %p1250_p10 = scmp.lt.s32.totalorder %s1241_s10, %s1241_s10 }
  0x4a   : > { %p1244_p7 = pnand %p1242_p5, %p1556_p8  ;;  %p1251_p11 = por %p1250_p10, %p1249_p4 }
  0x4c   : > { %p1245_p9 = pneg %p1244_p7 }
  0x4e   : > { %p1252_p12 = pnand %p1251_p11, %p1245_p9 }
  0x50   : > { %1255 = shalt.err (!%p1252_p12)
}
  0x51   : > { %1101 = dma.hbm_to_vmem [thread:$0]  (!%p1540_p6), %s1875_s5, 2048, %s1546_s13, [#allocation12], %s1453_s23, %s1453_s23, %s1454_s28  }
  0x52   : > { %s1455_s9 = smov [#allocation7]   ;;  %s1456_s14 = smov [#allocation10]  }
  0x53   : > { %s234_s12 = sshll.u32 %s1455_s9, 4  ;;  %s259_s15 = sshll.u32 %s1456_s14, 4  ;;  %s235_s12 = int_to_ptr.vmem [resolvable:$true] %s234_s12  ;;  %s260_s15 = int_to_ptr.vmem [resolvable:$true] %s259_s15 }
  0x54   : > { %s1256_s18 = scalar_lea.hbm %s1872_s2, 2048 }
  0x55   : > { %p1257_p13 = scmp.ne.s32.totalorder %s1872_s2, %s1256_s18  ;;  %p1263_p5 = scmp.lt.u32.totalorder %s1256_s18, %s1872_s2 }
  0x57   : > { %p1259_p0 = pnand %p1257_p13, %p1556_p8 }
  0x59   : > { %p1260_p2 = pneg %p1259_p0 }
  0x5b   : > { %p1265_p7 = pnand %p1263_p5, %p1260_p2 }
  0x5d   : > { %1268 = shalt.err (!%p1265_p7)
}
  0x5e   : > { %s1269_s13 = scalar_lea.vmem %s235_s12, 2048  ;;  %p1277_p11 = scmp.lt.s32.totalorder %s235_s12, %s235_s12 }
  0x5f   : > { %p1270_p9 = scmp.ne.s32.totalorder %s235_s12, %s1269_s13  ;;  %p1278_p12 = scmp.lt.s32.totalorder %s1269_s13, %s1269_s13 }
  0x61   : > { %p1272_p4 = pnand %p1270_p9, %p1556_p8  ;;  %p1279_p1 = por %p1278_p12, %p1277_p11 }
  0x63   : > { %p1273_p10 = pneg %p1272_p4 }
  0x65   : > { %p1280_p3 = pnand %p1279_p1, %p1273_p10 }
  0x67   : > { %1283 = shalt.err (!%p1280_p3)
}
  0x68   : > { %1092 = dma.hbm_to_vmem [thread:$0]  (!%p1540_p6), %s1872_s2, 2048, %s235_s12, [#allocation6], %s1453_s23, %s1453_s23, %s1454_s28  }
  0x69   : > { %s1284_s17 = scalar_lea.hbm %s1874_s4, 16 }
  0x6a   : > { %p1285_p1 = scmp.ne.s32.totalorder %s1874_s4, %s1284_s17  ;;  %p1291_p0 = scmp.lt.u32.totalorder %s1284_s17, %s1874_s4 }
  0x6c   : > { %p1287_p3 = pnand %p1285_p1, %p1556_p8 }
  0x6e   : > { %p1288_p13 = pneg %p1287_p3 }
  0x70   : > { %p1293_p2 = pnand %p1291_p0, %p1288_p13 }
  0x72   : > { %1296 = shalt.err (!%p1293_p2)
}
  0x73   : > { %s1297_s29 = scalar_lea.vmem %s260_s15, 16  ;;  %s1304_s23 = scalar_lea.vmem %s260_s15, 32 }
  0x74   : > { %p1298_p5 = scmp.ne.s32.totalorder %s260_s15, %s1297_s29  ;;  %p1305_p4 = scmp.lt.s32.totalorder %s260_s15, %s260_s15 }
  0x75   : > { %p1306_p10 = scmp.lt.s32.totalorder %s1304_s23, %s1297_s29 }
  0x76   : > { %p1300_p7 = pnand %p1298_p5, %p1556_p8 }
  0x77   : > { %p1307_p11 = por %p1306_p10, %p1305_p4 }
  0x78   : > { %p1301_p9 = pneg %p1300_p7 }
  0x7a   : > { %p1308_p12 = pnand %p1307_p11, %p1301_p9 }
  0x7c   : > { %1311 = shalt.err (!%p1308_p12)
}
  0x7d   : > { %1098 = dma.hbm_to_vmem [thread:$0]  (!%p1540_p6), %s1874_s4, 16, %s260_s15, [#allocation9]  }
  0x7e   : > { %s1457_s13 = smov [#allocation13]   ;;  %s1312_s16 = scalar_lea.hbm %s1876_s6, 16 }
  0x7f   : > { %s283_s22 = sshll.u32 %s1457_s13, 4  ;;  %p1313_p1 = scmp.ne.s32.totalorder %s1876_s6, %s1312_s16  ;;  %s284_s22 = int_to_ptr.vmem [resolvable:$true] %s283_s22 }
  0x80   : > { %p1319_p0 = scmp.lt.u32.totalorder %s1312_s16, %s1876_s6 }
  0x81   : > { %p1315_p3 = pnand %p1313_p1, %p1556_p8 }
  0x83   : > { %p1316_p13 = pneg %p1315_p3 }
  0x85   : > { %p1321_p2 = pnand %p1319_p0, %p1316_p13 }
  0x87   : > { %1324 = shalt.err (!%p1321_p2)
}
  0x88   : > { %s1325_s15 = scalar_lea.vmem %s284_s22, 16  ;;  %s1332_s10 = scalar_lea.vmem %s284_s22, 32 }
  0x89   : > { %p1326_p5 = scmp.ne.s32.totalorder %s284_s22, %s1325_s15  ;;  %p1333_p4 = scmp.lt.s32.totalorder %s284_s22, %s284_s22 }
  0x8a   : > { %p1334_p10 = scmp.lt.s32.totalorder %s1332_s10, %s1325_s15 }
  0x8b   : > { %p1328_p7 = pnand %p1326_p5, %p1556_p8 }
  0x8c   : > { %p1335_p11 = por %p1334_p10, %p1333_p4 }
  0x8d   : > { %p1329_p9 = pneg %p1328_p7 }
  0x8f   : > { %p1336_p12 = pnand %p1335_p11, %p1329_p9 }
  0x91   : > { %1339 = shalt.err (!%p1336_p12)
}
  0x92   : > { %1104 = dma.hbm_to_vmem [thread:$0]  (!%p1540_p6), %s1876_s6, 16, %s284_s22, [#allocation12]  }
  0x93   : > { %s803_s19 = sadd.s32 4294967294, %s1448_s27   ;;  %s1689_s11 = sadd.s32 1, %s1448_s27  }
  0x94   : > { %s30_s28 = ssub.s32 %s1448_s27, %s1689_s11  ;;  %s33_s12 = sadd.s32 1, %s1444_s26 }
  0x95   : > { %p31_p8 = scmp.eq.s32.totalorder %s30_s28, 0  ;;  %p40_p1 = scmp.ne.s32.totalorder %s1444_s26, %s1440_s25 }
  0x96   : > { %p41_p3 = scmp.eq.s32.totalorder %s1448_s27, 0  ;;  %p46_p13 = scmp.ne.s32.totalorder %s1440_s25, %s1436_s24 }
  0x97   : > { %s1700_s13 = scalar_select %p31_p8, %s1444_s26, %s33_s12  }
  0x98   : > { %p1702_p0 = por %p41_p3, %p40_p1  ;;  %p1885_p2 = scmp.eq.s32.totalorder %s1524_s30, 0 }
  0x99   : > { %p196_p5 = scmp.eq.s32.totalorder %s1524_s30, 1  ;;  %p202_p7 = scmp.eq.s32.totalorder %s803_s19, 1 }
  0x9a   : > { %p1708_p6 = por %p1885_p2, %p46_p13  ;;  %p1119_p9 = scmp.lt.s32.totalorder %s1448_s27, 2 }
  0x9b   : > { %s294_s14 = sand.u32 1, %s1444_s26   ;;  %p1715_p4 = por %p196_p5, %p40_p1 }
  0x9c   : > { %p1719_p10 = por %p202_p7, %p46_p13  ;;  %s812_s18 = sshll.u32 %s294_s14, 3 }
  0x9d   : > { %s1887_s16 = scalar_select %p1715_p4, 1, 0 }
  0x9e   : > { %s1888_s17 = scalar_select %p1719_p10, 1, 0 }
  0x9f   : > { %s813_s20 = sshll.u32 %s1448_s27, 7  ;;  %s298_s29 = scalar_lea.vmem [#allocation2], %s812_s18 }
  0xa0   : > { %s1727_s10 = scalar_lea.hbm %s1870_s0, %s813_s20  ;;  %s305_s23 = sshll.u32 %s298_s29, 4  ;;  %s1729_s23 = int_to_ptr.vmem [resolvable:$true] %s305_s23 }
  0xa1   : > { %p1733_p11 = pnand %p1119_p9, %p1702_p0  ;;  %s295_s28 = scalar_lea.sflag [#allocation3], %s294_s14 }
  0xa2   : > { %s1340_s12 = scalar_lea.hbm %s1727_s10, 128  ;;  %s1345_s21 = scalar_lea.hbm %s1870_s0, 256 }
  0xa3   : > { %p1341_p12 = scmp.ne.s32.totalorder %s1727_s10, %s1340_s12  ;;  %p1342_p8 = pneg %p1733_p11 }
  0xa4   : > { %p1346_p13 = scmp.lt.u32.totalorder %s1727_s10, %s1870_s0  ;;  %p1347_p0 = scmp.lt.u32.totalorder %s1345_s21, %s1340_s12 }
  0xa5   : > { %p1343_p1 = pnand %p1342_p8, %p1341_p12  ;;  %p1349_p5 = scmp.lt.u32.totalorder %s1340_s12, %s1727_s10 }
  0xa6   : > { %p1348_p2 = por %p1347_p0, %p1346_p13 }
  0xa7   : > { %p1344_p3 = pneg %p1343_p1 }
  0xa8   : > { %p1350_p7 = por %p1349_p5, %p1348_p2 }
  0xaa   : > { %p1351_p9 = pnand %p1350_p7, %p1344_p3 }
  0xac   : > { %1354 = shalt.err (!%p1351_p9)
}
  0xad   : > { %s1355_s14 = scalar_lea.vmem %s1729_s23, 128  ;;  %s1458_s29 = smov [#allocation2]  }
  0xae   : > { %p1356_p12 = scmp.ne.s32.totalorder %s1729_s23, %s1355_s14  ;;  %s1360_s18 = sshll.u32 %s1458_s29, 4  ;;  %s1361_s18 = int_to_ptr.vmem [resolvable:$false] %s1360_s18 }
  0xaf   : > { %s1362_s20 = scalar_lea.vmem %s1361_s18, 256  ;;  %p1363_p4 = scmp.lt.s32.totalorder %s1729_s23, %s1361_s18 }
  0xb0   : > { %p1358_p1 = pnand %p1356_p12, %p1342_p8  ;;  %p1364_p13 = scmp.lt.s32.totalorder %s1362_s20, %s1355_s14 }
  0xb2   : > { %p1359_p10 = pneg %p1358_p1  ;;  %p1365_p0 = por %p1364_p13, %p1363_p4 }
  0xb4   : > { %p1366_p2 = pnand %p1365_p0, %p1359_p10 }
  0xb6   : > { %1369 = shalt.err (!%p1366_p2)
}
  0xb7   : > { %1108 = dma.hbm_to_vmem [thread:$0]  (!%p1733_p11), %s1727_s10, 128, %s1729_s23, %s295_s28  }
  0xb8   : > { %p1890_p3 = scmp.ne.s32.totalorder %s1881_s8, 0 }
  0xb9   : > { %s1765_s12 = sand.u32 (!%p1890_p3), 1, %s1440_s25  }
  0xba   : > { %314 = sbr.rel (%p1890_p3) target bundleno = 698 (0x2ba), region = 48  ;;  %s815_s21 = sshll.u32 (!%p1890_p3), %s1765_s12, 3 }
  0xbb   : > { %s317_s9 = scalar_lea.sflag (!%p1890_p3), [#allocation3], %s1765_s12  ;;  %s1771_s15 = scalar_lea.vmem (!%p1890_p3), [#allocation2], %s815_s21 }
  0xc1   : > { %1415 = dma.done.wait (%p1708_p6), %s317_s9, 128  }
  0xc2   : > { %1417 = vsyncadd (%p1708_p6), %s317_s9, 4294967168  ;;  %p1891_p4 = scmp.eq.s32.totalorder %s1524_s30, 0 }
  0xc4   : > { %1419 = dma.done.wait (%p1891_p4), [#allocation6], 4096   ;;  %p1892_p10 = pmov %p1891_p4 }
  0xc5   : > { %p1893_p11 = pmov %p1891_p4 }
  0xc6   : > { %1421 = vsyncadd (%p1892_p10), [#allocation6], 4294963200 }
  0xc7   : > { %1423 = dma.done.wait (%p1893_p11), [#allocation9], 32   ;;  %p1894_p8 = pmov %p1891_p4 }
  0xc8   : > { %p1895_p5 = pmov %p1891_p4 }
  0xc9   : > { %1425 = vsyncadd (%p1894_p8), [#allocation9], 4294967264 }
  0xca   : > { %1427 = dma.done.wait (%p1895_p5), [#allocation12], 2064   ;;  %p1896_p7 = pmov %p1891_p4 }
  0xcb   : > { %v1459_v0 = vmov 0.0|0.0   ;;  %vm1460_vm0 = vmmov 0   ;;  %v1461_v1 = vmov 0.0   ;;  %v469_v2 = vld [vmem:[#allocation7] sm:$0xff]  ;;  %v470_v3 = vld [vmem:[#allocation7 + $0x8] sm:$0xff]  ;;  %v471_v4 = vld [vmem:[#allocation7 + $0x10] sm:$0xff] }
  0xcc   : > { %1429 = vsyncadd (%p1896_p7), [#allocation12], 4294965232  ;;  %1010 = vmatprep.subr.bf16.mxu1 %v1459_v0  ;;  %986 = vmatprep.subr.bf16.mxu0 %v1459_v0  ;;  %v1011_v5 = vpack.c.bf16 %v470_v3, %v469_v2  ;;  %v472_v6 = vld [vmem:[#allocation7 + $0x18] sm:$0xff]  ;;  %v376_v7 = vld [vmem:[#allocation5] sm:$0xff]  ;;  %s827_s8 = sshll.u32 %s1524_s30, 7  ;;  %s374_s22 = scalar_lea.vmem [#allocation14], %s815_s21 }
  0xcd   : > { %948 = vmatprep.mubr.msk.f32.mxu1 %vm1460_vm0, %v1461_v1  ;;  %913 = vmatprep.mubr.msk.f32.mxu0 %vm1460_vm0, %v1461_v1  ;;  %v1014_v8 = vpack.c.bf16 %v472_v6, %v471_v4  ;;  %v473_v9 = vld [vmem:[#allocation7 + $0x20] sm:$0xff]  ;;  %v377_v10 = vld [vmem:[#allocation5 + $0x8] sm:$0xff]  ;;  %v378_v13 = vld [vmem:[#allocation5 + $0x10] sm:$0xff]  ;;  %s676_s10 = sshll.u32 %s374_s22, 4  ;;  %s1826_s28 = scalar_lea.hbm %s1877_s7, %s827_s8  ;;  %s1828_s10 = int_to_ptr.vmem [resolvable:$true] %s676_s10 }
  0xce   : > { %1012 = vmatpush3.bf16.msra.mxu1 %v1011_v5  ;;  %v474_v11 = vld [vmem:[#allocation7 + $0x28] sm:$0xff]  ;;  %v987_v12 = vpack.c.bf16 %v377_v10, %v376_v7  ;;  %v379_v14 = vld [vmem:[#allocation5 + $0x18] sm:$0xff]  ;;  %v380_v17 = vld [vmem:[#allocation5 + $0x20] sm:$0xff]  ;;  %s663_s14 = scalar_lea.sflag [#allocation4], %s1765_s12  ;;  %s1370_s29 = scalar_lea.vmem %s1828_s10, 128 }
  0xcf   : > { %1013 = vmatprep.subr.bf16.mxu1 %v1459_v0  ;;  %v990_v15 = vpack.c.bf16 %v379_v14, %v378_v13  ;;  %v1017_v16 = vpack.c.bf16 %v474_v11, %v473_v9  ;;  %v381_v18 = vld [vmem:[#allocation5 + $0x28] sm:$0xff]  ;;  %v475_v19 = vld [vmem:[#allocation7 + $0x30] sm:$0xff]  ;;  %v476_v20 = vld [vmem:[#allocation7 + $0x38] sm:$0xff]  ;;  %p1371_p6 = scmp.ne.s32.totalorder %s1828_s10, %s1370_s29  ;;  %p1897_p9 = scmp.ne.s32.totalorder %s1887_s16, 0 }
  0xd0   : > { %988 = vmatpush3.bf16.msra.mxu0 %v987_v12  ;;  %v993_v21 = vpack.c.bf16 %v381_v18, %v380_v17  ;;  %v1020_v22 = vpack.c.bf16 %v476_v20, %v475_v19  ;;  %v382_v23 = vld [vmem:[#allocation5 + $0x30] sm:$0xff]  ;;  %v383_v24 = vld [vmem:[#allocation5 + $0x38] sm:$0xff]  ;;  %v477_v25 = vld [vmem:[#allocation7 + $0x40] sm:$0xff]  ;;  %s1462_s30 = smov [#allocation14]  }
  0xd1   : > { %989 = vmatprep.subr.bf16.mxu0 %v1459_v0  ;;  %v478_v26 = vld [vmem:[#allocation7 + $0x48] sm:$0xff]  ;;  %v996_v27 = vpack.c.bf16 %v383_v24, %v382_v23  ;;  %v384_v29 = vld [vmem:[#allocation5 + $0x40] sm:$0xff]  ;;  %v479_v31 = vld [vmem:[#allocation7 + $0x50] sm:$0xff]  ;;  %p1372_p12 = pnand %p1371_p6, %p1897_p9  ;;  %s1374_s18 = sshll.u32 %s1462_s30, 4  ;;  %s1375_s18 = int_to_ptr.vmem [resolvable:$false] %s1374_s18 }
  0xd2   : > { %1015 = vmatpush3.bf16.msra.mxu1 %v1014_v8  ;;  %v1023_v28 = vpack.c.bf16 %v478_v26, %v477_v25  ;;  %v385_v30 = vld [vmem:[#allocation5 + $0x48] sm:$0xff]  ;;  %v480_v32 = vld [vmem:[#allocation7 + $0x58] sm:$0xff]  ;;  %v386_v35 = vld [vmem:[#allocation5 + $0x50] sm:$0xff]  ;;  %s1376_s20 = scalar_lea.vmem %s1375_s18, 256  ;;  %p1377_p13 = scmp.lt.s32.totalorder %s1828_s10, %s1375_s18 }
  0xd3   : > { %1016 = vmatprep.subr.bf16.mxu1 %v1459_v0  ;;  %v999_v33 = vpack.c.bf16 %v385_v30, %v384_v29  ;;  %v1026_v34 = vpack.c.bf16 %v480_v32, %v479_v31  ;;  %v387_v36 = vld [vmem:[#allocation5 + $0x58] sm:$0xff]  ;;  %v481_v37 = vld [vmem:[#allocation7 + $0x60] sm:$0xff]  ;;  %v482_v38 = vld [vmem:[#allocation7 + $0x68] sm:$0xff]  ;;  %p1373_p1 = pneg %p1372_p12  ;;  %p1378_p0 = scmp.lt.s32.totalorder %s1376_s20, %s1370_s29 }
  0xd4   : > { %991 = vmatpush3.bf16.msra.mxu0 %v990_v15  ;;  %v1002_v39 = vpack.c.bf16 %v387_v36, %v386_v35  ;;  %v1029_v40 = vpack.c.bf16 %v482_v38, %v481_v37  ;;  %v388_v41 = vld [vmem:[#allocation5 + $0x60] sm:$0xff]  ;;  %v389_v42 = vld [vmem:[#allocation5 + $0x68] sm:$0xff]  ;;  %v483_v43 = vld [vmem:[#allocation7 + $0x70] sm:$0xff] }
  0xd5   : > { %992 = vmatprep.subr.bf16.mxu0 %v1459_v0  ;;  %v484_v44 = vld [vmem:[#allocation7 + $0x78] sm:$0xff]  ;;  %v1005_v45 = vpack.c.bf16 %v389_v42, %v388_v41  ;;  %v390_v47 = vld [vmem:[#allocation5 + $0x70] sm:$0xff]  ;;  %v568_v51 = vld [vmem:[#allocation11] sm:$0xff]  ;;  %p1379_p2 = por %p1378_p0, %p1377_p13 }
  0xd6   : > { %1018 = vmatpush3.bf16.msra.mxu1 %v1017_v16  ;;  %v1032_v46 = vpack.c.bf16 %v484_v44, %v483_v43  ;;  %v391_v48 = vld [vmem:[#allocation5 + $0x78] sm:$0xff]  ;;  %v569_v52 = vld [vmem:[#allocation11 + $0x8] sm:$0xff]  ;;  %v572_v57 = vld [vmem:[#allocation11 + $0x20] sm:$0xff] }
  0xd7   : > { %1019 = vmatprep.subr.bf16.mxu1 %v1459_v0  ;;  %v1008_v49 = vpack.c.bf16 %v391_v48, %v390_v47  ;;  %v375_v50 = vld [vmem:[%s1771_s15] sm:$0xff]  ;;  %v1035_v53 = vpack.c.bf16 %v569_v52, %v568_v51  ;;  %v576_v63 = vld [vmem:[#allocation11 + $0x40] sm:$0xff]  ;;  %v824_v12 = vld [vmem:[#allocation10] ss:$0 sm:$0xff]  ;;  %p1380_p3 = pnand %p1379_p2, %p1373_p1 }
  0xd8   : > { %994 = vmatpush3.bf16.msra.mxu0 %v993_v21  ;;  %v570_v54 = vld [vmem:[#allocation11 + $0x10] sm:$0xff]  ;;  %v571_v55 = vld [vmem:[#allocation11 + $0x18] sm:$0xff]  ;;  %v573_v58 = vld [vmem:[#allocation11 + $0x28] sm:$0xff] }
  0xd9   : > { %995 = vmatprep.subr.bf16.mxu0 %v1459_v0  ;;  %v1038_v56 = vpack.c.bf16 %v571_v55, %v570_v54  ;;  %v1041_v59 = vpack.c.bf16 %v573_v58, %v572_v57  ;;  %v574_v60 = vld [vmem:[#allocation11 + $0x30] sm:$0xff]  ;;  %v575_v61 = vld [vmem:[#allocation11 + $0x38] sm:$0xff]  ;;  %v577_v2 = vld [vmem:[#allocation11 + $0x48] sm:$0xff] }
  0xda   : > { %1021 = vmatpush3.bf16.msra.mxu1 %v1020_v22  ;;  %v1044_v62 = vpack.c.bf16 %v575_v61, %v574_v60  ;;  %v578_v3 = vld [vmem:[#allocation11 + $0x50] sm:$0xff]  ;;  %v579_v4 = vld [vmem:[#allocation11 + $0x58] sm:$0xff]  ;;  %v580_v6 = vld [vmem:[#allocation11 + $0x60] sm:$0xff] }
  0xdb   : > { %1022 = vmatprep.subr.bf16.mxu1 %v1459_v0  ;;  %v1050_v5 = vpack.c.bf16 %v579_v4, %v578_v3  ;;  %v581_v7 = vld [vmem:[#allocation11 + $0x68] sm:$0xff]  ;;  %v582_v9 = vld [vmem:[#allocation11 + $0x70] sm:$0xff]  ;;  %v583_v10 = vld [vmem:[#allocation11 + $0x78] sm:$0xff] }
  0xdc   : > { %997 = vmatpush3.bf16.msra.mxu0 %v996_v27  ;;  %v1053_v8 = vpack.c.bf16 %v581_v7, %v580_v6  ;;  %v1056_v11 = vpack.c.bf16 %v583_v10, %v582_v9  ;;  %v823_v19 = vld [vmem:[#allocation8] ss:$0 sm:$0xff]  ;;  %v825_v25 = vld [vmem:[#allocation13] ss:$0 sm:$0xff] }
  0xdd   : > { %998 = vmatprep.subr.bf16.mxu0 %v1459_v0 }
  0xde   : > { %1024 = vmatpush3.bf16.msra.mxu1 %v1023_v28 }
  0xdf   : > { %1025 = vmatprep.subr.bf16.mxu1 %v1459_v0 }
  0xe0   : > { %1000 = vmatpush3.bf16.msra.mxu0 %v999_v33 }
  0xe1   : > { %1001 = vmatprep.subr.bf16.mxu0 %v1459_v0 }
  0xe2   : > { %1027 = vmatpush3.bf16.msra.mxu1 %v1026_v34 }
  0xe3   : > { %1028 = vmatprep.subr.bf16.mxu1 %v1459_v0 }
  0xe4   : > { %1003 = vmatpush3.bf16.msra.mxu0 %v1002_v39 }
  0xe5   : > { %1004 = vmatprep.subr.bf16.mxu0 %v1459_v0 }
  0xe6   : > { %1030 = vmatpush3.bf16.msra.mxu1 %v1029_v40 }
  0xe7   : > { %1031 = vmatprep.subr.bf16.mxu1 %v1459_v0 }
  0xe8   : > { %1006 = vmatpush3.bf16.msra.mxu0 %v1005_v45 }
  0xe9   : > { %1007 = vmatprep.subr.bf16.mxu0 %v1459_v0 }
  0xea   : > { %1033 = vmatpush3.bf16.msra.mxu1 %v1032_v46 }
  0xec   : > { %1009 = vmatpush3.bf16.msra.mxu0 %v1008_v49 }
  0xed   : > { %949 = vmatmul.mubr.f32.vlgmr.msra.gmra.mrb[0].mxu1 %v375_v50  ;;  %1034 = vmatprep.subr.bf16.mxu0 %v1459_v0 }
  0xef   : > { %914 = vmatmul.mubr.f32.vlgmr.msra.gmra.mrb[0].mxu0 %v375_v50 }
  0xf0   : > { %1036 = vmatpush3.bf16.msra.mxu0 %v1035_v53  ;;  %983 = vmatprep.mubr.msk.f32.mxu0 %vm1460_vm0, %v1461_v1  ;;  %v1047_v1 = vpack.c.bf16 %v577_v2, %v576_v63 }
  0xf1   : > { %1037 = vmatprep.subr.bf16.mxu0 %v1459_v0 }
  0xf4   : > { %1039 = vmatpush3.bf16.msra.mxu0 %v1038_v56 }
  0xf5   : > { %1040 = vmatprep.subr.bf16.mxu0 %v1459_v0 }
  0xf8   : > { %1042 = vmatpush3.bf16.msra.mxu0 %v1041_v59 }
  0xf9   : > { %1043 = vmatprep.subr.bf16.mxu0 %v1459_v0 }
  0xfc   : > { %1045 = vmatpush3.bf16.msra.mxu0 %v1044_v62 }
  0xfd   : > { %1046 = vmatprep.subr.bf16.mxu0 %v1459_v0 }
 0x100   : > { %1048 = vmatpush3.bf16.msra.mxu0 %v1047_v1 }
 0x101   : > { %1049 = vmatprep.subr.bf16.mxu0 %v1459_v0 }
 0x104   : > { %1051 = vmatpush3.bf16.msra.mxu0 %v1050_v5 }
 0x105   : > { %1052 = vmatprep.subr.bf16.mxu0 %v1459_v0 }
 0x108   : > { %1054 = vmatpush3.bf16.msra.mxu0 %v1053_v8 }
 0x109   : > { %1055 = vmatprep.subr.bf16.mxu0 %v1459_v0 }
 0x10c   : > { %1057 = vmatpush3.bf16.msra.mxu0 %v1056_v11 }
 0x1c0   : > { %v558_v13 = vpop.f32.mrb[0].mxu1 }
 0x1c1   : > { %v559_v14 = vadd.f32 %v824_v12, %v558_v13  ;;  %v950_v15 = vpop.f32.mrb[1].mxu1 }
 0x1c2   : > { %v465_v17 = vpop.f32.mrb[0].mxu0 }
 0x1c3   : > { %v563_v16 = vmul.f32 0.70710677, %v559_v14  ;;  %v915_v18 = vpop.f32.mrb[1].mxu0  ;;  %v562_v21 = vmul.f32 0.5, %v559_v14  ;;  %v466_v0 = vadd.f32 %v823_v19, %v465_v17 }
 0x1c5   : > { %1170 = verf.f32 %v563_v16 }
 0x1cf   : > { %v1171_v20 = vpop.eup %1170 }
 0x1d0   : > { %v565_v22 = vadd.f32 1.0, %v1171_v20 }
 0x1d2   : > { %v566_v23 = vmul.f32 %v565_v22, %v562_v21 }
 0x1d4   : > { %v567_v24 = vmul.f32 %v566_v23, %v466_v0 }
 0x1d6   : > { %984 = vmatmul.mubr.f32.vlgmr.msra.gmra.mrb[2].mxu0 %v567_v24 }
 0x2a9   : > { %v657_v26 = vpop.f32.mrb[2].mxu0 }
 0x2aa   : > { %v658_v27 = vadd.f32 %v825_v25, %v657_v26  ;;  %v985_v28 = vpop.f32.mrb[3].mxu0 }
 0x2ac   : > { %661 = vst [vmem:[%s374_s22] sm:$0xff] %v658_v27 }
 0x2ad   : > { %1383 = shalt.err (!%p1380_p3)
}
 0x2ae   : > { %s1384_s12 = scalar_lea.hbm %s1826_s28, 128  ;;  %s1388_s15 = scalar_lea.hbm %s1877_s7, 256 }
 0x2af   : > { %p1385_p4 = scmp.ne.s32.totalorder %s1826_s28, %s1384_s12  ;;  %p1389_p8 = scmp.lt.u32.totalorder %s1826_s28, %s1877_s7 }
 0x2b0   : > { %p1390_p5 = scmp.lt.u32.totalorder %s1388_s15, %s1384_s12  ;;  %p1392_p6 = scmp.lt.u32.totalorder %s1384_s12, %s1826_s28 }
 0x2b1   : > { %p1386_p10 = pnand %p1385_p4, %p1897_p9 }
 0x2b2   : > { %p1391_p7 = por %p1390_p5, %p1389_p8 }
 0x2b3   : > { %p1387_p11 = pneg %p1386_p10 }
 0x2b4   : > { %p1393_p12 = por %p1392_p6, %p1391_p7 }
 0x2b6   : > { %p1394_p1 = pnand %p1393_p12, %p1387_p11 }
 0x2b8   : > { %1397 = shalt.err (!%p1394_p1)
}
 0x2b9   : > { %1084 = dma.vmem_to_hbm [thread:$0]  (%p1897_p9), %s1828_s10, 128, %s1826_s28, %s663_s14  }
 0x2ba PF: > { %s688_s23 = sand.u32 1, %s1436_s24   ;;  %p1898_p13 = scmp.ne.s32.totalorder %s1888_s17, 0 }
 0x2bb   : > { %p1899_p0 = scmp.ge.s32.totalorder %s1448_s27, 2  ;;  %s689_s19 = scalar_lea.sflag [#allocation4], %s688_s23 }
 0x2bd   : > { %p1110_p2 = pnand %p1899_p0, %p1898_p13 }
 0x2bf   : > { %1431 = dma.done.wait (!%p1110_p2), %s689_s19, 128  }
 0x2c0   : > { %1433 = vsyncadd (!%p1110_p2), %s689_s19, 4294967168  ;;  %p23_p3 = scmp.ge.s32.totalorder %s1689_s11, 4   ;;  %s1900_s24 = smov %s1440_s25 }
 0x2c1   : > { %s1901_s25 = smov %s1444_s26  ;;  %s1902_s26 = smov %s1700_s13 }
 0x2c2   : > { %s1903_s27 = smov %s1689_s11  ;;  %25 = sbr.rel (!%p23_p3) target bundleno = 8 (0x8), region = 117 }
 0x2c9   :  { %694 = vsyncpa [#allocation3], 1 }
 0x2ca   :  { %696 = vsyncpa [#allocation3 + $0x1], 1 }
 0x2cb   :  { %697 = vsyncpa [#allocation6], 1 }
 0x2cc   :  { %698 = vsyncpa [#allocation9], 1 }
 0x2cd   :  { %699 = vsyncpa [#allocation12], 1 }
 0x2ce   :  { %700 = vsyncpa [#allocation4], 1 }
 0x2cf   :  { %702 = vsyncpa [#allocation4 + $0x1], 1 }

</bundles_post_ra>
